<compile_context>
chip_gen: v5e
topology: v5e:2x2
jax: 0.10.0
libtpu: 0.0.40
codegen_flags: <defaults>
</compile_context>

<pallas_src>
import math

import jax
import jax.numpy as jnp
from jax.experimental import pallas as pl
from jax.experimental.pallas import tpu as pltpu

_LANES = 128


def _min_sublanes(dtype) -> int:
    # dtype-aware second-minor tile multiple: f32 -> 8, bf16 -> 16, int8 -> 32
    return {4: 8, 2: 16, 1: 32}.get(jnp.dtype(dtype).itemsize, 8)


def _tile_budget():
    """Return (per-block bytes, scoped VMEM limit) sized per TPU generation."""
    try:
        vmem = int(getattr(pltpu.get_tpu_info(), "vmem_capacity_bytes", 0))
    except Exception:
        vmem = 0
    if vmem >= (128 << 20):
        # v5e / v6e: 128 MiB physical VMEM -> 8 MiB blocks; 2 bufs x (in+out)
        # x 8 MiB = 32 MiB double-buffered, limit 48 MiB leaves headroom.
        return 8 << 20, 48 << 20
    # v7x (64 MiB physical) or unknown: stay conservative.
    # 4 MiB blocks -> 16 MiB double-buffered footprint under a 32 MiB limit.
    return 4 << 20, 32 << 20


# ---------------------------------------------------------------------------
# Pallas kernel: backward hot path  (out = -coeff * grad, in place)
# ---------------------------------------------------------------------------
def _neg_scale_kernel(coeff_ref, g_ref, o_ref):
    # coeff lives in SMEM; negate on the scalar ALU (free) and cast once to the
    # gradient dtype so bf16 stays a native bf16 VPU multiply per packed vreg.
    neg_c = (-coeff_ref[0]).astype(o_ref.dtype)
    o_ref[...] = (g_ref[...] * neg_c).astype(o_ref.dtype)


def _neg_scale_2d(view, coeff1):
    """view: (rows, 128) lane-dense gradient slab; coeff1: (1,) f32 in SMEM."""
    rows, lanes = view.shape
    dtype = view.dtype
    itemsize = jnp.dtype(dtype).itemsize
    sub = _min_sublanes(dtype)
    tile_bytes, vmem_limit = _tile_budget()

    row_bytes = lanes * itemsize
    target_rows = max(sub, (tile_bytes // row_bytes) // sub * sub)

    if rows <= sub:
        tm = rows                      # single full-extent block (always legal)
    else:
        # Force >= 2 blocks so the "parallel" grid axis shards across both
        # TensorCores on v7x, while keeping each block <= the tile budget.
        half = -(-rows // 2)
        half_aligned = -(-half // sub) * sub
        tm = max(sub, min(target_rows, half_aligned))

    grid = (pl.cdiv(rows, tm),)

    return pl.pallas_call(
        _neg_scale_kernel,
        out_shape=jax.ShapeDtypeStruct((rows, lanes), dtype),
        grid=grid,
        in_specs=[
            pl.BlockSpec(memory_space=pltpu.SMEM),          # coeff scalar
            pl.BlockSpec((tm, lanes), lambda i: (i, 0)),    # grad tile
        ],
        out_specs=pl.BlockSpec((tm, lanes), lambda i: (i, 0)),
        input_output_aliases={1: 0},                        # scale in place
        compiler_params=pltpu.CompilerParams(
            dimension_semantics=("parallel",),
            vmem_limit_bytes=vmem_limit),
        cost_estimate=pl.CostEstimate(
            flops=rows * lanes,
            transcendentals=0,
            bytes_accessed=2 * rows * lanes * itemsize),
    )(coeff1, view)


def _neg_scale_pallas(g, coeff1):
    """out = -coeff * g with the Pallas streaming kernel on the aligned bulk."""
    orig_shape = g.shape
    dtype = g.dtype
    total = g.size
    if total == 0:
        return g

    flat = g.reshape(-1)
    main = (total // _LANES) * _LANES

    if main == 0:
        # Tiny (<128 element) gradient: kernel launch overhead dominates.
        return (flat * (-coeff1[0]).astype(dtype)).reshape(orig_shape)

    rows = main // _LANES
    if main == total:
        out = _neg_scale_2d(flat.reshape(rows, _LANES), coeff1)
        return out.reshape(orig_shape)

    # Unaligned total: Pallas on the aligned prefix, plain jnp on the tail
    # (<128 elems) — avoids masked partial stores and oversized blocks.
    head = _neg_scale_2d(flat[:main].reshape(rows, _LANES), coeff1).reshape(-1)
    tail = flat[main:] * (-coeff1[0]).astype(dtype)
    return jnp.concatenate([head, tail]).reshape(orig_shape)


# ---------------------------------------------------------------------------
# GradientReverseFunction equivalent (custom VJP)
# ---------------------------------------------------------------------------
@jax.custom_vjp
def gradient_reverse(x, coeff):
    # forward: identity on values (x * 1.0) -- no kernel / no HBM traffic.
    del coeff
    return x


def _grl_fwd(x, coeff):
    return x, coeff


def _grl_bwd(coeff, g):
    # PyTorch returns (grad_output.neg() * coeff, None); coeff gets no grad.
    coeff_arr = jnp.asarray(coeff, jnp.float32)
    coeff1 = coeff_arr if coeff_arr.shape == (1,) else coeff_arr.reshape((1,))
    # TODO(synk): integer-dtype gradients would truncate (no round/clamp);
    # only float gradients are expected on this path.
    return (_neg_scale_pallas(g, coeff1), jnp.zeros_like(jnp.asarray(coeff)))


gradient_reverse.defvjp(_grl_fwd, _grl_bwd)


# ---------------------------------------------------------------------------
# WarmStartGradientReverseLayer (module-equivalent wrapper)
# ---------------------------------------------------------------------------
class WarmStartGradientReverseLayer:
    def __init__(self, alpha=1.0, lo=0.0, hi=1.0, max_iters=1000.0,
                 auto_step=False):
        self.alpha = alpha
        self.lo = lo
        self.hi = hi
        self.iter_num = 0
        self.max_iters = max_iters
        self.auto_step = auto_step

    def _coeff(self):
        # host-side warm-start schedule (scalar math, stays in Python)
        # TODO(synk): like the PyTorch original, iter_num is Python state; under
        # jit the coefficient freezes at trace time (eager semantics only).
        return float(
            2.0 * (self.hi - self.lo)
            / (1.0 + math.exp(-self.alpha * self.iter_num / self.max_iters))
            - (self.hi - self.lo) + self.lo
        )

    def __call__(self, x):
        coeff = self._coeff()
        if self.auto_step:
            self.step()
        # Pass coeff already as a (1,) f32 array so backward does no extra
        # host-side negate / reshape ops.
        return gradient_reverse(x, jnp.full((1,), coeff, dtype=jnp.float32))

    def step(self):
        self.iter_num += 1


# ---------------------------------------------------------------------------
# main
# ---------------------------------------------------------------------------
if __name__ == "__main__":
    key = jax.random.PRNGKey(0)
    x = jax.random.normal(key, (2, 4, 16, 16), dtype=jnp.float32)  # NCHW

    layer = WarmStartGradientReverseLayer(alpha=1.0, lo=0.0, hi=1.0,
                                          max_iters=1000.0, auto_step=True)
    # warm up the schedule a bit so coeff != 0
    for _ in range(10):
        layer.step()

    # forward (identity on values)
    y = layer(x)
    jax.block_until_ready(y)
    assert y.shape == x.shape and y.dtype == x.dtype
    assert jnp.allclose(y, x)

    # backward check: d/dx sum(layer(x)) == -coeff * ones   (aligned, 2 blocks)
    coeff_val = 2.0 / (1.0 + math.exp(-1.0 * 10 / 1000.0)) - 1.0
    grads = jax.grad(
        lambda inp: jnp.sum(gradient_reverse(inp, jnp.float32(coeff_val))))(x)
    jax.block_until_ready(grads)
    assert jnp.allclose(grads, -coeff_val * jnp.ones_like(x), atol=1e-6)

    # multi-tile grid path (many rows -> several parallel blocks)
    xl = jax.random.normal(jax.random.PRNGKey(1), (8, 8, 128, 128),
                           dtype=jnp.float32)
    gl = jax.grad(
        lambda inp: jnp.sum(gradient_reverse(inp, jnp.float32(0.25))))(xl)
    jax.block_until_ready(gl)
    assert jnp.allclose(gl, -0.25 * jnp.ones_like(xl), atol=1e-6)

    # bf16 gradients exercise the dtype-aware (16, 128) tiling / native bf16 mul
    xb = x.astype(jnp.bfloat16)
    gb = jax.grad(
        lambda inp: jnp.sum(gradient_reverse(inp, jnp.float32(0.5))))(xb)
    jax.block_until_ready(gb)
    assert jnp.allclose(gb.astype(jnp.float32),
                        -0.5 * jnp.ones(x.shape, jnp.float32), atol=1e-2)

    # unaligned element count (200 = 128 prefix + 72 tail) and tiny (<128) case
    xu = jax.random.normal(jax.random.PRNGKey(2), (4, 50), dtype=jnp.float32)
    gu = jax.grad(
        lambda inp: jnp.sum(gradient_reverse(inp, jnp.float32(0.3))))(xu)
    jax.block_until_ready(gu)
    assert jnp.allclose(gu, -0.3 * jnp.ones_like(xu), atol=1e-6)

    xt = jax.random.normal(jax.random.PRNGKey(3), (3, 7), dtype=jnp.float32)
    gt = jax.grad(
        lambda inp: jnp.sum(gradient_reverse(inp, jnp.float32(0.7))))(xt)
    jax.block_until_ready(gt)
    assert jnp.allclose(gt, -0.7 * jnp.ones_like(xt), atol=1e-6)

    print("KERNEL_OK")
</pallas_src>

<mosaic_0001>
module attributes {stable_mosaic.version = 11 : i64} {
  func.func @_neg_scale_kernel(%arg0: i32, %arg1: memref<1xf32, #tpu.memory_space<smem>>, %arg2: memref<8x128xf32, #tpu.memory_space<vmem>>, %arg3: memref<8x128xf32, #tpu.memory_space<vmem>>) attributes {dimension_semantics = [#tpu.dimension_semantics<parallel>], iteration_bounds = array<i64: 2>, scalar_prefetch = 0 : i64, scratch_operands = 0 : i64, tpu.core_type = #tpu.core_type<tc>, window_params = [{transform_indices = @transform_0, window_bounds = array<i64: 1>}, {transform_indices = @transform_1, window_bounds = array<i64: 8, 128>}, {transform_indices = @transform_2, window_bounds = array<i64: 8, 128>}]} {
    %c0 = arith.constant 0 : index
    %0 = memref.load %arg1[%c0] : memref<1xf32, #tpu.memory_space<smem>>
    %cst = arith.constant 0.000000e+00 : f32
    %1 = arith.subf %cst, %0 : f32
    %c0_0 = arith.constant 0 : index
    %c0_1 = arith.constant 0 : index
    %2 = vector.load %arg2[%c0_0, %c0_1] : memref<8x128xf32, #tpu.memory_space<vmem>>, vector<8x128xf32>
    %3 = vector.broadcast %1 : f32 to vector<8x128xf32>
    %4 = arith.mulf %2, %3 : vector<8x128xf32>
    %c0_2 = arith.constant 0 : index
    %c0_3 = arith.constant 0 : index
    %5 = vector.load %arg3[%c0_2, %c0_3] : memref<8x128xf32, #tpu.memory_space<vmem>>, vector<8x128xf32>
    tpu.vector_store %arg3[%c0_2, %c0_3], %4 {strides = array<i32>} : memref<8x128xf32, #tpu.memory_space<vmem>>, vector<8x128xf32>,
    return
  }
  func.func @transform_0(%arg0: i32) -> i32 {
    %c0_i32 = arith.constant 0 : i32
    %c0_i32_0 = arith.constant 0 : i32
    return %c0_i32 : i32
  }
  func.func @transform_1(%arg0: i32) -> (i32, i32) {
    %c0_i32 = arith.constant 0 : i32
    %c0_i32_0 = arith.constant 0 : i32
    return %arg0, %c0_i32 : i32, i32
  }
  func.func @transform_2(%arg0: i32) -> (i32, i32) {
    %c0_i32 = arith.constant 0 : i32
    %c0_i32_0 = arith.constant 0 : i32
    return %arg0, %c0_i32 : i32, i32
  }
}

</mosaic_0001>

<bundles_post_ra>
// kernel: tpu_custom_call.1
= control target key start
LH: loop header
LB: loop body
LE: loop exit
PB: predicated region body
PF: predicated region fallthrough
CT: control target
= control target key end

     0   :  { %s555_s0 = inlined_call_operand.<no memory space> [shape: f32[1], index: 0, kind: input, shape index: {}]   ;;  %s556_s1 = inlined_call_operand.hbm [shape: f32[16,128], index: 1, kind: input, shape index: {}, may-alias: {1,2}]   ;;  %s557_s2 = inlined_call_operand.hbm [shape: f32[16,128], index: 2, kind: output, shape index: {}, may-alias: {1,2}]  }
   0x1   :  { %7 = sst [smem:[#allocation2]] %s555_s0 }
   0x2   :  { %8 = vsyncpa [#allocation4], 0 }
   0x3   :  { %10 = vsyncpa [#allocation4 + $0x1], 0 }
   0x4   :  { %11 = vsyncpa [#allocation5], 0 }
   0x5   :  { %13 = vsyncpa [#allocation5 + $0x1], 0  ;;  %s428_s11 = smov 0   ;;  %s430_s12 = smov 0  }
   0x6   :  { %s432_s13 = smov 0   ;;  %s434_s14 = smov 0  }
   0x7 LB: > { %s449_s0 = sadd.s32 4294967295, %s408_s14   ;;  %s254_s15 = sadd.s32 4294967294, %s408_s14   ;;  %s408_s14 = sphi %s434_s14, %s567_s14   ;;  %s404_s13 = sphi %s432_s13, %s566_s13   ;;  %s400_s12 = sphi %s430_s12, %s565_s12   ;;  %s396_s11 = sphi %s428_s11, %s564_s11  }
   0x8   : > { %s453_s16 = sadd.s32 1, %s408_s14   ;;  %s47_s17 = sadd.s32 1, %s404_s13 }
   0x9   : > { %s44_s18 = ssub.s32 %s408_s14, %s453_s16  ;;  %p54_p0 = scmp.ne.s32.totalorder %s404_s13, %s400_s12 }
   0xa   : > { %p45_p1 = scmp.eq.s32.totalorder %s44_s18, 0  ;;  %p55_p2 = scmp.eq.s32.totalorder %s408_s14, 0 }
   0xb   : > { %p60_p3 = scmp.ne.s32.totalorder %s400_s12, %s396_s11  ;;  %p61_p4 = scmp.eq.s32.totalorder %s449_s0, 0 }
   0xc   : > { %s465_s19 = scalar_select %p45_p1, %s404_s13, %s47_s17  }
   0xd   : > { %p467_p5 = por %p55_p2, %p54_p0  ;;  %p471_p6 = por %p61_p4, %p60_p3 }
   0xe   : > { %p84_p7 = scmp.eq.s32.totalorder %s449_s0, 1  ;;  %p90_p8 = scmp.eq.s32.totalorder %s254_s15, 1 }
   0xf   : > { %p278_p10 = scmp.lt.s32.totalorder %s408_s14, 2  ;;  %s113_s24 = sand.u32 1, %s404_s13  }
  0x10   : > { %p478_p11 = por %p84_p7, %p54_p0  ;;  %p482_p12 = por %p90_p8, %p60_p3 }
  0x11   : > { %s258_s25 = sshll.u32 %s408_s14, 3  ;;  %s257_s26 = sshll.u32 %s113_s24, 3 }
  0x12   : > { %s121_s29 = scalar_lea.hbm %s556_s1, %s258_s25  ;;  %s117_s3 = scalar_lea.vmem [#allocation3], %s257_s26 }
  0x13   : > { %s123_s30 = sshll.u32 %s121_s29, 4  ;;  %s125_s4 = sshll.u32 %s117_s3, 4  ;;  %s124_s30 = int_to_ptr.hbm [resolvable:$true] %s123_s30  ;;  %s126_s4 = int_to_ptr.vmem [resolvable:$true] %s125_s4 }
  0x14   : > { %p493_p13 = pnand %p278_p10, %p467_p5  ;;  %p259_p0 = scmp.ge.s32.totalorder %s408_s14, 1 }
  0x15   : > { %p130_p1 = scmp.lt.s32.totalorder %s408_s14, 3  ;;  %s114_s6 = scalar_lea.sflag [#allocation4], %s113_s24 }
  0x16   : > { %s312_s7 = sshra.s32 %s124_s30, 4  ;;  %p316_p3 = pneg %p493_p13  ;;  %s313_s7 = int_to_ptr.hbm [resolvable:$true] %s312_s7 }
  0x17   : > { %s314_s8 = scalar_lea.hbm %s313_s7, 8  ;;  %s319_s15 = scalar_lea.hbm %s556_s1, 16 }
  0x18   : > { %p315_p2 = scmp.ne.s32.totalorder %s313_s7, %s314_s8  ;;  %p320_p5 = scmp.lt.s32.totalorder %s313_s7, %s556_s1 }
  0x19   : > { %p321_p8 = scmp.lt.s32.totalorder %s319_s15, %s314_s8 }
  0x1a   : > { %p317_p4 = pnand %p316_p3, %p315_p2 }
  0x1b   : > { %p322_p10 = por %p321_p8, %p320_p5 }
  0x1c   : > { %p318_p7 = pneg %p317_p4 }
  0x1e   : > { %p323_p9 = pnand %p322_p10, %p318_p7 }
  0x20   : > { %326 = shalt.err (!%p323_p9)
}
  0x21   : > { %273 = dma.hbm_to_vmem [thread:$0]  (!%p493_p13), %s124_s30, 128, %s126_s4, %s114_s6  }
  0x22   : > { %p131_p2 = pnand %p259_p0, %p130_p1 }
  0x23   : > { %s514_s20 = sand.u32 (!%p131_p2), 1, %s400_s12  }
  0x24   : > { %134 = sbr.rel (%p131_p2) target bundleno = 57 (0x39), region = 28  ;;  %s260_s24 = sshll.u32 (!%p131_p2), %s514_s20, 3 }
  0x25   : > { %s137_s25 = scalar_lea.sflag (!%p131_p2), [#allocation4], %s514_s20  ;;  %s140_s26 = scalar_lea.vmem (!%p131_p2), [#allocation3], %s260_s24 }
  0x29   : > { %387 = dma.done.wait (%p471_p6), %s137_s25, 128  }
  0x2a   : > { %389 = vsyncadd (%p471_p6), %s137_s25, 4294967168  ;;  %s162_s27 = sld [smem:[#allocation2]]  ;;  %s263_s28 = sshll.u32 %s449_s0, 3  ;;  %v164_v0 = vld [vmem:[%s140_s26] sm:$0xff] }
  0x2b   : > { %s179_s3 = scalar_lea.hbm %s557_s2, %s263_s28  ;;  %s161_s4 = scalar_lea.vmem [#allocation6], %s260_s24 }
  0x2c   : > { %s181_s5 = sshll.u32 %s161_s4, 4  ;;  %s183_s7 = sshll.u32 %s179_s3, 4  ;;  %s182_s5 = int_to_ptr.vmem [resolvable:$true] %s181_s5  ;;  %s184_s7 = int_to_ptr.hbm [resolvable:$true] %s183_s7 }
  0x2d   : > { %s169_s21 = scalar_lea.sflag [#allocation5], %s514_s20  ;;  %s356_s8 = sshra.s32 %s184_s7, 4  ;;  %s357_s8 = int_to_ptr.hbm [resolvable:$true] %s356_s8 }
  0x2e   : > { %s358_s9 = scalar_lea.hbm %s357_s8, 8  ;;  %s362_s15 = scalar_lea.hbm %s557_s2, 16 }
  0x2f   : > { %p359_p6 = scmp.ne.s32.totalorder %s357_s8, %s358_s9  ;;  %p363_p0 = scmp.lt.s32.totalorder %s357_s8, %s557_s2 }
  0x30   : > { %s163_s6 = ssub.f32 0.0, %s162_s27  ;;  %p364_p1 = scmp.lt.s32.totalorder %s362_s15, %s358_s9 }
  0x31   : > { %p360_p9 = pnand %p359_p6, %p478_p11 }
  0x32   : > { %v165_v1 = vstv %s163_s6  ;;  %p365_p3 = por %p364_p1, %p363_p0 }
  0x33   : > { %v166_v2 = vmul.f32 %v165_v1, %v164_v0  ;;  %p361_p13 = pneg %p360_p9 }
  0x35   : > { %167 = vst [vmem:[%s161_s4] sm:$0xff] %v166_v2  ;;  %p366_p4 = pnand %p365_p3, %p361_p13 }
  0x37   : > { %369 = shalt.err (!%p366_p4)
}
  0x38   : > { %268 = dma.vmem_to_hbm [thread:$0]  (%p478_p11), %s182_s5, 128, %s184_s7, %s169_s21  }
  0x39 PF: > { %s195_s20 = sand.u32 1, %s396_s11   ;;  %p563_p7 = scmp.ge.s32.totalorder %s408_s14, 2 }
  0x3a   : > { %s196_s24 = scalar_lea.sflag [#allocation5], %s195_s20 }
  0x3b   : > { %p275_p5 = pnand %p563_p7, %p482_p12 }
  0x3d   : > { %p276_p8 = pneg %p275_p5 }
  0x3f   : > { %391 = dma.done.wait (%p276_p8), %s196_s24, 128  }
  0x40   : > { %393 = vsyncadd (%p276_p8), %s196_s24, 4294967168  ;;  %p16_p10 = scmp.ge.s32.totalorder %s453_s16, 4   ;;  %s564_s11 = smov %s400_s12 }
  0x41   : > { %s565_s12 = smov %s404_s13  ;;  %s566_s13 = smov %s465_s19 }
  0x42   : > { %s567_s14 = smov %s453_s16  ;;  %18 = sbr.rel (!%p16_p10) target bundleno = 7 (0x7), region = 73 }
  0x47   :  { %202 = vsyncpa [#allocation4], 1 }
  0x48   :  { %204 = vsyncpa [#allocation4 + $0x1], 1 }
  0x49   :  { %205 = vsyncpa [#allocation5], 1 }
  0x4a   :  { %207 = vsyncpa [#allocation5 + $0x1], 1 }

</bundles_post_ra>
